<compile_context>
chip_gen: v7x
topology: tpu7x:2x2x1
jax: 0.10.0
libtpu: 0.0.40
codegen_flags: <defaults>
</compile_context>

<pallas_src>
import jax
import jax.numpy as jnp
from jax.experimental import pallas as pl
from jax.experimental.pallas import tpu as pltpu


def _entmoid15_kernel(x_ref, o_ref):
    x = x_ref[...].astype(jnp.float32)
    abs_x = jnp.abs(x)
    # tau = (|x| + sqrt(relu(8 - |x|^2))) / 2
    tau = 0.5 * (abs_x + jnp.sqrt(jnp.maximum(8.0 - abs_x * abs_x, 0.0)))
    # y_neg = 0.25 * relu(tau - |x|)^2 ; masked_fill(tau <= |x|, 2) is a no-op here.
    y_neg = 0.25 * jnp.square(jnp.maximum(tau - abs_x, 0.0))
    o_ref[...] = jnp.where(x >= 0, 1.0 - y_neg, y_neg).astype(o_ref.dtype)


def entmoid15(x):
    """Elementwise Entmoid15 forward. Works for any shape / float dtype."""
    orig_shape = x.shape
    orig_dtype = x.dtype
    n = int(x.size)
    if n == 0:
        return x

    flat = x.reshape(-1)

    # Lane-dense layout: widest lane count (multiple of 128) dividing N.
    lane = 128
    for cand in (1024, 512, 256, 128):
        if n % cand == 0:
            lane = cand
            break
    pad = (-n) % lane  # nonzero only when N is not a multiple of 128 (rare)
    if pad:
        # TODO(synk): ragged tail path costs one extra HBM pad copy + slice.
        flat = jnp.pad(flat, (0, pad))
    rows = (n + pad) // lane
    x2d = flat.reshape(rows, lane)

    # Sublane packing granularity for the I/O dtype (8 f32 / 16 bf16 / 32 i8).
    itemsize = jnp.dtype(orig_dtype).itemsize
    sub = max(8, 32 // max(itemsize, 1))

    # Target ~4 MiB of I/O per block per buffer (independent of dtype). With
    # in+out double buffering that's ~16 MiB VMEM -> safe under the 32 MiB
    # scoped default on all of v5e/v6e/v7x, and already at the HBM-roofline
    # plateau for tile-size sweeps.
    target_rows = max(sub, (4 << 20) // (itemsize * lane))
    if rows <= target_rows:
        row_block = rows  # full-extent sublane block (always legal)
    else:
        row_block = max(sub, (target_rows // sub) * sub)

    grid = (pl.cdiv(rows, row_block),)

    out = pl.pallas_call(
        _entmoid15_kernel,
        out_shape=jax.ShapeDtypeStruct((rows, lane), orig_dtype),
        grid_spec=pltpu.PrefetchScalarGridSpec(
            num_scalar_prefetch=0,
            grid=grid,
            in_specs=[pl.BlockSpec((row_block, lane), lambda i: (i, 0))],
            out_specs=pl.BlockSpec((row_block, lane), lambda i: (i, 0)),
        ),
        compiler_params=pltpu.CompilerParams(
            dimension_semantics=("parallel",),
        ),
        cost_estimate=pl.CostEstimate(
            flops=10 * n,
            transcendentals=n,
            bytes_accessed=2 * n * itemsize,
        ),
    )(x2d)

    out = out.reshape(-1)
    if pad:
        out = out[:n]
    return out.reshape(orig_shape)


def entmoid15_ref(x):
    """Pure-JAX reference matching the PyTorch code (incl. masked_fill)."""
    xf = x.astype(jnp.float32)
    abs_x = jnp.abs(xf)
    is_pos = xf >= 0
    tau = 0.5 * (abs_x + jnp.sqrt(jnp.maximum(8.0 - abs_x * abs_x, 0.0)))
    tau = jnp.where(tau <= abs_x, 2.0, tau)
    y_neg = 0.25 * jnp.square(jnp.maximum(tau - abs_x, 0.0))
    return jnp.where(is_pos, 1.0 - y_neg, y_neg).astype(x.dtype)


if __name__ == "__main__":
    key = jax.random.PRNGKey(0)

    # Small NCHW input; Entmoid15 has no parameters.
    x = jax.random.normal(key, (2, 4, 16, 16), dtype=jnp.float32) * 3.0
    out = jax.block_until_ready(entmoid15(x))
    ref = entmoid15_ref(x)
    assert out.shape == x.shape and out.dtype == x.dtype
    assert jnp.allclose(out, ref, atol=1e-6, rtol=1e-6), "mismatch vs reference"

    # bf16 wire dtype (compute still f32 inside the kernel).
    x_bf = x.astype(jnp.bfloat16)
    out_bf = jax.block_until_ready(entmoid15(x_bf))
    assert out_bf.dtype == jnp.bfloat16
    assert jnp.allclose(out_bf.astype(jnp.float32),
                        entmoid15_ref(x_bf).astype(jnp.float32),
                        atol=2e-2, rtol=2e-2)

    # Ragged element count (not a multiple of 128) exercises the fallback
    # pad path and the trailing slice.
    x_odd = jax.random.normal(jax.random.PRNGKey(1), (3, 5, 7), jnp.float32) * 3.0
    out_odd = jax.block_until_ready(entmoid15(x_odd))
    assert out_odd.shape == x_odd.shape
    assert jnp.allclose(out_odd, entmoid15_ref(x_odd), atol=1e-6, rtol=1e-6)

    print("KERNEL_OK")
</pallas_src>

<mosaic_0001>
module attributes {stable_mosaic.version = 11 : i64} {
  func.func @_entmoid15_kernel(%arg0: i32, %arg1: memref<2x1024xf32, #tpu.memory_space<vmem>>, %arg2: memref<2x1024xf32, #tpu.memory_space<vmem>>) attributes {dimension_semantics = [#tpu.dimension_semantics<parallel>], iteration_bounds = array<i64: 1>, scalar_prefetch = 0 : i64, scratch_operands = 0 : i64, tpu.core_type = #tpu.core_type<tc>, window_params = [{transform_indices = @transform_0, window_bounds = array<i64: 2, 1024>}, {transform_indices = @transform_1, window_bounds = array<i64: 2, 1024>}]} {
    %c0 = arith.constant 0 : index
    %c0_0 = arith.constant 0 : index
    %0 = vector.load %arg1[%c0, %c0_0] : memref<2x1024xf32, #tpu.memory_space<vmem>>, vector<2x1024xf32>
    %1 = math.absf %0 : vector<2x1024xf32>
    %2 = arith.mulf %1, %1 : vector<2x1024xf32>
    %cst = arith.constant 8.000000e+00 : f32
    %3 = vector.broadcast %cst : f32 to vector<2x1024xf32>
    %4 = arith.subf %3, %2 : vector<2x1024xf32>
    %cst_1 = arith.constant 0.000000e+00 : f32
    %5 = vector.broadcast %cst_1 : f32 to vector<2x1024xf32>
    %6 = arith.maximumf %4, %5 : vector<2x1024xf32>
    %7 = math.sqrt %6 : vector<2x1024xf32>
    %8 = arith.addf %1, %7 : vector<2x1024xf32>
    %cst_2 = arith.constant 5.000000e-01 : f32
    %9 = vector.broadcast %cst_2 : f32 to vector<2x1024xf32>
    %10 = arith.mulf %9, %8 : vector<2x1024xf32>
    %11 = arith.subf %10, %1 : vector<2x1024xf32>
    %cst_3 = arith.constant 0.000000e+00 : f32
    %12 = vector.broadcast %cst_3 : f32 to vector<2x1024xf32>
    %13 = arith.maximumf %11, %12 : vector<2x1024xf32>
    %14 = arith.mulf %13, %13 : vector<2x1024xf32>
    %cst_4 = arith.constant 2.500000e-01 : f32
    %15 = vector.broadcast %cst_4 : f32 to vector<2x1024xf32>
    %16 = arith.mulf %15, %14 : vector<2x1024xf32>
    %cst_5 = arith.constant 0.000000e+00 : f32
    %17 = vector.broadcast %cst_5 : f32 to vector<2x1024xf32>
    %18 = arith.cmpf oge, %0, %17 : vector<2x1024xf32>
    %cst_6 = arith.constant 1.000000e+00 : f32
    %19 = vector.broadcast %cst_6 : f32 to vector<2x1024xf32>
    %20 = arith.subf %19, %16 : vector<2x1024xf32>
    %21 = arith.select %18, %20, %16 : vector<2x1024xi1>, vector<2x1024xf32>
    %c0_7 = arith.constant 0 : index
    %c0_8 = arith.constant 0 : index
    %22 = vector.load %arg2[%c0_7, %c0_8] : memref<2x1024xf32, #tpu.memory_space<vmem>>, vector<2x1024xf32>
    tpu.vector_store %arg2[%c0_7, %c0_8], %21 {strides = array<i32>} : memref<2x1024xf32, #tpu.memory_space<vmem>>, vector<2x1024xf32>,
    return
  }
  func.func @transform_0(%arg0: i32) -> (i32, i32) {
    %c0_i32 = arith.constant 0 : i32
    %c0_i32_0 = arith.constant 0 : i32
    return %arg0, %c0_i32 : i32, i32
  }
  func.func @transform_1(%arg0: i32) -> (i32, i32) {
    %c0_i32 = arith.constant 0 : i32
    %c0_i32_0 = arith.constant 0 : i32
    return %arg0, %c0_i32 : i32, i32
  }
}

</mosaic_0001>

<bundles_post_ra>
// kernel: tpu_custom_call.1
= control target key start
LH: loop header
LB: loop body
LE: loop exit
PB: predicated region body
PF: predicated region fallthrough
CT: control target
= control target key end

     0   :  { %6 = vsyncpa [#allocation3], 0  ;;  %s170_s0 = inlined_call_operand.hbm [shape: f32[2,1024], index: 0, kind: input, shape index: {}]   ;;  %s171_s1 = inlined_call_operand.hbm [shape: f32[2,1024], index: 1, kind: output, shape index: {}]  }
   0x1   :  { %7 = vsyncpa [#allocation4], 0  ;;  %s134_s6 = smov [#allocation2]   ;;  %s86_s10 = scalar_lea.hbm %s170_s0, 256 }
   0x2   :  { %s14_s7 = sshll.u32 %s134_s6, 4  ;;  %p87_p0 = scmp.ne.s32.totalorder %s170_s0, %s86_s10  ;;  %s15_s7 = int_to_ptr.vmem [resolvable:$true] %s14_s7 }
   0x3   :  { %p90_p1 = scmp.lt.u32.totalorder %s86_s10, %s170_s0 }
   0x5   :  { %p92_p2 = pnand %p90_p1, %p87_p0 }
   0x7   :  { %95 = shalt.err (!%p92_p2)
}
   0x8   :  { %s96_s15 = scalar_lea.vmem %s15_s7, 256  ;;  %p101_p4 = scmp.lt.s32.totalorder %s15_s7, %s15_s7 }
   0x9   :  { %p97_p3 = scmp.ne.s32.totalorder %s15_s7, %s96_s15  ;;  %p102_p5 = scmp.lt.s32.totalorder %s96_s15, %s96_s15 }
   0xb   :  { %p103_p6 = por %p102_p5, %p101_p4 }
   0xd   :  { %p104_p7 = pnand %p103_p6, %p97_p3 }
   0xf   :  { %107 = shalt.err (!%p104_p7)
}
  0x10   :  { %17 = dma.hbm_to_vmem [thread:$0]  %s170_s0, 256, %s15_s7, [#allocation3]  }
  0x11   :  { %130 = dma.done.wait [#allocation3], 256  }
  0x12   :  { %131 = vsyncadd [#allocation3], 4294967040  ;;  %v21_v0 = vld [vmem:[#allocation2] sm:$0xff]  ;;  %v22_v1 = vld [vmem:[#allocation2 + $0x8] sm:$0xff]  ;;  %s135_s0 = smov [#allocation5]  }
  0x13   :  { %v23_v2 = vand.u32 2147483647, %v21_v0  ;;  %v24_v3 = vand.u32 2147483647, %v22_v1  ;;  %vm57_vm4 = vcmp.ge.f32.partialorder %v21_v0, 0.0  ;;  %s71_s18 = sshll.u32 %s135_s0, 4  ;;  %s72_s18 = int_to_ptr.vmem [resolvable:$true] %s71_s18 }
  0x14   :  { %vm58_vm5 = vcmp.ge.f32.partialorder %v22_v1, 0.0  ;;  %s108_s19 = scalar_lea.vmem %s72_s18, 256  ;;  %p113_p9 = scmp.lt.s32.totalorder %s72_s18, %s72_s18 }
  0x15   :  { %v25_v4 = vmul.f32 %v23_v2, %v23_v2  ;;  %v26_v5 = vmul.f32 %v24_v3, %v24_v3  ;;  %p109_p8 = scmp.ne.s32.totalorder %s72_s18, %s108_s19  ;;  %p114_p10 = scmp.lt.s32.totalorder %s108_s19, %s108_s19 }
  0x17   :  { %v27_v6 = vsub.f32 8.0, %v25_v4  ;;  %v28_v7 = vsub.f32 8.0, %v26_v5  ;;  %p115_p11 = por %p114_p10, %p113_p9 }
  0x19   :  { %v29_v8 = vmax.f32 %v27_v6, 0.0  ;;  %v30_v9 = vmax.f32 %v28_v7, 0.0  ;;  %p116_p12 = pnand %p115_p11, %p109_p8 }
  0x1b   :  { %82 = vrsqrt.f32 %v29_v8  ;;  %vm33_vm0 = vcmp.eq.f32.partialorder %v29_v8, inf  ;;  %v36_v11 = vand.u32 2147483648, %v29_v8  ;;  %vm35_vm1 = vcmp.eq.f32.partialorder %v29_v8, 0.0 }
  0x1c   :  { %84 = vrsqrt.f32 %v30_v9  ;;  %vm40_vm2 = vcmp.eq.f32.partialorder %v30_v9, inf  ;;  %v43_v14 = vand.u32 2147483648, %v30_v9  ;;  %vm42_vm3 = vcmp.eq.f32.partialorder %v30_v9, 0.0 }
  0x25   :  { %v83_v10 = vpop.eup %82 }
  0x26   :  { %v85_v12 = vpop.eup %84  ;;  %v32_v13 = vmul.f32 %v83_v10, %v29_v8 }
  0x27   :  { %v39_v15 = vmul.f32 %v85_v12, %v30_v9 }
  0x28   :  { %v34_v16 = vsel %vm33_vm0, %v29_v8, %v32_v13 }
  0x29   :  { %v37_v17 = vsel %vm35_vm1, %v36_v11, %v34_v16  ;;  %v41_v18 = vsel %vm40_vm2, %v30_v9, %v39_v15 }
  0x2a   :  { %v45_v19 = vadd.f32 %v37_v17, %v23_v2  ;;  %v44_v20 = vsel %vm42_vm3, %v43_v14, %v41_v18 }
  0x2b   :  { %v46_v21 = vadd.f32 %v44_v20, %v24_v3 }
  0x2c   :  { %v47_v22 = vmul.f32 0.5, %v45_v19 }
  0x2d   :  { %v48_v23 = vmul.f32 0.5, %v46_v21 }
  0x2e   :  { %v49_v24 = vsub.f32 %v47_v22, %v23_v2 }
  0x2f   :  { %v50_v25 = vsub.f32 %v48_v23, %v24_v3 }
  0x30   :  { %v51_v26 = vmax.f32 %v49_v24, 0.0 }
  0x31   :  { %v52_v27 = vmax.f32 %v50_v25, 0.0 }
  0x32   :  { %v53_v28 = vmul.f32 %v51_v26, %v51_v26 }
  0x33   :  { %v54_v29 = vmul.f32 %v52_v27, %v52_v27 }
  0x34   :  { %v55_v30 = vmul.f32 0.25, %v53_v28 }
  0x35   :  { %v56_v31 = vmul.f32 0.25, %v54_v29 }
  0x36   :  { %v59_v32 = vsub.f32 1.0, %v55_v30 }
  0x37   :  { %v60_v33 = vsub.f32 1.0, %v56_v31 }
  0x38   :  { %v61_v34 = vsel %vm57_vm4, %v59_v32, %v55_v30 }
  0x39   :  { %63 = vst [vmem:[#allocation5] sm:$0xff] %v61_v34  ;;  %v62_v35 = vsel %vm58_vm5, %v60_v33, %v56_v31 }
  0x3a   :  { %64 = vst [vmem:[#allocation5 + $0x8] sm:$0xff] %v62_v35 }
  0x3b   :  { %119 = shalt.err (!%p116_p12)
}
  0x3c   :  { %s120_s22 = scalar_lea.hbm %s171_s1, 256 }
  0x3d   :  { %p121_p13 = scmp.ne.s32.totalorder %s171_s1, %s120_s22  ;;  %p124_p0 = scmp.lt.u32.totalorder %s120_s22, %s171_s1 }
  0x3f   :  { %p126_p1 = pnand %p124_p0, %p121_p13 }
  0x41   :  { %129 = shalt.err (!%p126_p1)
}
  0x42   :  { %74 = dma.vmem_to_hbm [thread:$0]  %s72_s18, 256, %s171_s1, [#allocation4]  }
  0x43   :  { %132 = dma.done.wait [#allocation4], 256  }
  0x44   :  { %133 = vsyncadd [#allocation4], 4294967040 }
  0x45   :  { %78 = vsyncpa [#allocation3], 1 }
  0x46   :  { %79 = vsyncpa [#allocation4], 1 }

</bundles_post_ra>
